<compile_context>
chip_gen: v6e
topology: v6e:2x2x1
jax: 0.10.0
libtpu: 0.0.40
codegen_flags: <defaults>
</compile_context>

<pallas_src>
import functools

import jax
import jax.numpy as jnp
from jax.experimental import pallas as pl
from jax.experimental.pallas import tpu as pltpu


def _mlp_kernel(x_ref, w1_ref, b1_ref, w2_ref, b2_ref, w3_ref, b3_ref, o_ref):
    # Cast activations to the weights' dtype (no-op for the f32 path, bf16 for the
    # fast path); accumulate every matmul in f32 on the MXU.
    x = x_ref[...].astype(w1_ref.dtype)
    # Layer 1: Linear + ReLU
    h1 = jnp.dot(x, w1_ref[...], preferred_element_type=jnp.float32)
    h1 = jnp.maximum(h1 + b1_ref[...], 0.0)
    # Layer 2: Linear + ReLU (dominant (tm,256)@(256,256) matmul)
    h2 = jnp.dot(h1.astype(w2_ref.dtype), w2_ref[...],
                 preferred_element_type=jnp.float32)
    h2 = jnp.maximum(h2 + b2_ref[...], 0.0)
    # Layer 3: Linear (no activation)
    out = jnp.dot(h2.astype(w3_ref.dtype), w3_ref[...],
                  preferred_element_type=jnp.float32) + b3_ref[...]
    o_ref[...] = out.astype(o_ref.dtype)


def _round_up(x, m):
    return (x + m - 1) // m * m


def prepare_params(params, compute_dtype=jnp.bfloat16, lane_pad_output=False):
    """One-time weight prep, hoisted out of the per-call forward.

    compute_dtype:    dtype of the matmul weights. Default bf16 (fast MXU path on
                      v5e/v6e/v7x, f32 accumulation in-kernel). None -> exact f32.
                      Biases always stay f32 (added to f32 accumulators).
    lane_pad_output:  zero-pad the final layer's output width to a 128-multiple so the
                      kernel's output stores are full-lane (useful on v5e, single vst
                      slot). The forward then returns the padded slab; padded columns
                      are exactly zero and should be consumed/ignored by the caller.
                      Default off: embed_size-wide output -> minimal output HBM bytes.
    """
    w1, b1 = params["w1"], params["b1"]
    w2, b2 = params["w2"], params["b2"]
    w3, b3 = params["w3"], params["b3"]
    if lane_pad_output:
        pad = _round_up(max(w3.shape[1], 1), 128) - w3.shape[1]
        if pad:
            w3 = jnp.pad(w3, ((0, 0), (0, pad)))
            b3 = jnp.pad(b3, ((0, 0), (0, pad)))
    if compute_dtype is not None:
        w1 = w1.astype(compute_dtype)
        w2 = w2.astype(compute_dtype)
        w3 = w3.astype(compute_dtype)
    return {"w1": w1, "b1": b1, "w2": w2, "b2": b2, "w3": w3, "b3": b3}


@functools.partial(jax.jit, static_argnames=("tm", "out_dtype"))
def observation_encoder_forward(obs, params, tm=1024, out_dtype=None):
    """Pallas forward pass of ObservationEncoder.

    obs:       (..., obs_size) float32 (or bf16)
    params:    output of prepare_params (or raw f32 params) with
               w1 (obs,256), b1 (1,256), w2 (256,256), b2 (1,256),
               w3 (256,out), b3 (1,out)
    tm:        max batch-tile rows per grid step; keep a multiple of 128 (256 ideal).
    out_dtype: output dtype (default: obs.dtype). Use jnp.bfloat16 to halve writeback.
    """
    w1, b1 = params["w1"], params["b1"]
    w2, b2 = params["w2"], params["b2"]
    w3, b3 = params["w3"], params["b3"]

    obs_size = w1.shape[0]
    out_size = w3.shape[1]  # embed_size (or its lane-padded width)
    batch_shape = obs.shape[:-1]
    if out_dtype is None:
        out_dtype = obs.dtype

    x = obs.reshape(-1, obs_size)
    n = x.shape[0]

    if n <= tm:
        # Single full-array block: one grid step, no pipelining overhead.
        tm_eff = n
    else:
        # Even grid length (balances v7x's 2 TensorCores on the "parallel" axis),
        # tiles re-derived at 128-row granularity (v5e's native MXU M tile; also a
        # divisor of 256 for v6e/v7x). Ragged last block is masked by Pallas on
        # writeback (rows are independent, so OOB tail rows never reach the output).
        tiles = _round_up(pl.cdiv(n, tm), 2)
        tm_eff = _round_up(pl.cdiv(n, tiles), 128)
    grid = (pl.cdiv(n, tm_eff),)

    whole = lambda i: (0, 0)  # weights/biases: constant block index -> fetched once

    out = pl.pallas_call(
        _mlp_kernel,
        out_shape=jax.ShapeDtypeStruct((n, out_size), out_dtype),
        grid_spec=pltpu.PrefetchScalarGridSpec(
            num_scalar_prefetch=0,
            grid=grid,
            in_specs=[
                pl.BlockSpec((tm_eff, obs_size), lambda i: (i, 0)),  # x tile
                pl.BlockSpec(w1.shape, whole),                       # w1 (resident)
                pl.BlockSpec(b1.shape, whole),                       # b1
                pl.BlockSpec(w2.shape, whole),                       # w2
                pl.BlockSpec(b2.shape, whole),                       # b2
                pl.BlockSpec(w3.shape, whole),                       # w3
                pl.BlockSpec(b3.shape, whole),                       # b3
            ],
            out_specs=pl.BlockSpec((tm_eff, out_size), lambda i: (i, 0)),
        ),
        compiler_params=pltpu.CompilerParams(
            dimension_semantics=("parallel",),  # shards batch grid across TCs on v7x
        ),
    )(x, w1, b1, w2, b2, w3, b3)

    return out.reshape(*batch_shape, out_size)


def init_params(key, obs_size, embed_size, hidden=256, dtype=jnp.float32):
    """Deterministic init mirroring PyTorch nn.Linear default (U[-1/sqrt(fan_in), +])."""
    keys = jax.random.split(key, 6)

    def linear(kw, kb, fan_in, fan_out):
        bound = 1.0 / float(jnp.sqrt(jnp.float32(fan_in)))
        w = jax.random.uniform(kw, (fan_in, fan_out), dtype, -bound, bound)
        b = jax.random.uniform(kb, (1, fan_out), dtype, -bound, bound)
        return w, b

    w1, b1 = linear(keys[0], keys[1], obs_size, hidden)
    w2, b2 = linear(keys[2], keys[3], hidden, hidden)
    w3, b3 = linear(keys[4], keys[5], hidden, embed_size)
    return {"w1": w1, "b1": b1, "w2": w2, "b2": b2, "w3": w3, "b3": b3}


def reference_forward(obs, params):
    x = obs.reshape(-1, params["w1"].shape[0])
    h = jnp.maximum(x @ params["w1"] + params["b1"], 0.0)
    h = jnp.maximum(h @ params["w2"] + params["b2"], 0.0)
    out = h @ params["w3"] + params["b3"]
    return out.reshape(*obs.shape[:-1], -1)


if __name__ == "__main__":
    obs_size = 32
    embed_size = 64

    key = jax.random.PRNGKey(0)
    k_obs_a, k_obs_b, k_params = jax.random.split(key, 3)
    params = init_params(k_params, obs_size, embed_size)

    # One-time weight prep (hoisted out of the per-call forward).
    params_f32 = prepare_params(params, compute_dtype=None)   # exact f32 path
    params_bf16 = prepare_params(params)                      # default bf16 fast path

    # 1) Small batch, exact f32 path: single full-array block.
    obs_small = jax.random.normal(k_obs_a, (2, 8, obs_size), dtype=jnp.float32)
    out_small = jax.block_until_ready(observation_encoder_forward(obs_small, params_f32))
    assert out_small.shape == (2, 8, embed_size), out_small.shape
    ref_small = reference_forward(obs_small, params)
    err = float(jnp.max(jnp.abs(out_small - ref_small)))
    assert err < 1e-3, f"f32 small-batch mismatch: {err}"

    # 2) Larger ragged batch (5*123 = 615 rows), exact f32 path.
    obs_big = jax.random.normal(k_obs_b, (5, 123, obs_size), dtype=jnp.float32)
    ref_big = reference_forward(obs_big, params)
    out_big = jax.block_until_ready(observation_encoder_forward(obs_big, params_f32))
    assert out_big.shape == (5, 123, embed_size), out_big.shape
    err = float(jnp.max(jnp.abs(out_big - ref_big)))
    assert err < 1e-3, f"f32 big-batch mismatch: {err}"

    # 2b) Force the multi-step tiled grid (even grid, masked ragged last block).
    out_tiled = jax.block_until_ready(
        observation_encoder_forward(obs_big, params_f32, tm=256))
    err = float(jnp.max(jnp.abs(out_tiled - ref_big)))
    assert err < 1e-3, f"f32 tiled-grid mismatch: {err}"

    # 3) Default bf16 matmul path (f32 accumulation) — relaxed tolerance.
    #    NOTE: activations are cast to bf16 inside the kernel; large-magnitude
    #    observations can push the error above this tolerance.
    out_bf16 = jax.block_until_ready(observation_encoder_forward(obs_big, params_bf16))
    err = float(jnp.max(jnp.abs(out_bf16 - ref_big)))
    assert err < 5e-2, f"bf16 mismatch: {err}"

    # 4) bf16 output variant (halves output writeback bytes).
    out_bf16_o = jax.block_until_ready(
        observation_encoder_forward(obs_big, params_bf16, out_dtype=jnp.bfloat16))
    assert out_bf16_o.dtype == jnp.bfloat16
    err = float(jnp.max(jnp.abs(out_bf16_o.astype(jnp.float32) - ref_big)))
    assert err < 1e-1, f"bf16-out mismatch: {err}"

    print("KERNEL_OK")
</pallas_src>

<mosaic_0001>
module attributes {stable_mosaic.version = 11 : i64} {
  func.func @_mlp_kernel(%arg0: i32, %arg1: memref<16x32xf32, #tpu.memory_space<vmem>>, %arg2: memref<32x256xf32, #tpu.memory_space<vmem>>, %arg3: memref<1x256xf32, #tpu.memory_space<vmem>>, %arg4: memref<256x256xf32, #tpu.memory_space<vmem>>, %arg5: memref<1x256xf32, #tpu.memory_space<vmem>>, %arg6: memref<256x64xf32, #tpu.memory_space<vmem>>, %arg7: memref<1x64xf32, #tpu.memory_space<vmem>>, %arg8: memref<16x64xf32, #tpu.memory_space<vmem>>) attributes {dimension_semantics = [#tpu.dimension_semantics<parallel>], iteration_bounds = array<i64: 1>, scalar_prefetch = 0 : i64, scratch_operands = 0 : i64, tpu.core_type = #tpu.core_type<tc>, window_params = [{transform_indices = @transform_0, window_bounds = array<i64: 16, 32>}, {pipeline_mode = #tpu.pipeline_mode<synchronous>, transform_indices = @transform_1, window_bounds = array<i64: 32, 256>}, {pipeline_mode = #tpu.pipeline_mode<synchronous>, transform_indices = @transform_2, window_bounds = array<i64: 1, 256>}, {pipeline_mode = #tpu.pipeline_mode<synchronous>, transform_indices = @transform_3, window_bounds = array<i64: 256, 256>}, {pipeline_mode = #tpu.pipeline_mode<synchronous>, transform_indices = @transform_4, window_bounds = array<i64: 1, 256>}, {pipeline_mode = #tpu.pipeline_mode<synchronous>, transform_indices = @transform_5, window_bounds = array<i64: 256, 64>}, {pipeline_mode = #tpu.pipeline_mode<synchronous>, transform_indices = @transform_6, window_bounds = array<i64: 1, 64>}, {transform_indices = @transform_7, window_bounds = array<i64: 16, 64>}]} {
    %c0 = arith.constant 0 : index
    %c0_0 = arith.constant 0 : index
    %0 = vector.load %arg1[%c0, %c0_0] : memref<16x32xf32, #tpu.memory_space<vmem>>, vector<16x32xf32>
    %c0_1 = arith.constant 0 : index
    %c0_2 = arith.constant 0 : index
    %1 = vector.load %arg2[%c0_1, %c0_2] : memref<32x256xf32, #tpu.memory_space<vmem>>, vector<32x256xf32>
    %cst = arith.constant dense<0.000000e+00> : vector<16x256xf32>
    %2 = tpu.matmul %0, %1, %cst {dimension_numbers = #tpu.dot_dimension_numbers<[1], [0], [0], [1], [0, 0, 1, 1], [], []>} : vector<16x32xf32>, vector<32x256xf32>, vector<16x256xf32> -> vector<16x256xf32>
    %c0_3 = arith.constant 0 : index
    %c0_4 = arith.constant 0 : index
    %3 = vector.load %arg3[%c0_3, %c0_4] : memref<1x256xf32, #tpu.memory_space<vmem>>, vector<1x256xf32>
    %4 = vector.broadcast %3 : vector<1x256xf32> to vector<16x256xf32>
    %5 = arith.addf %2, %4 : vector<16x256xf32>
    %cst_5 = arith.constant 0.000000e+00 : f32
    %6 = vector.broadcast %cst_5 : f32 to vector<16x256xf32>
    %7 = arith.maximumf %5, %6 : vector<16x256xf32>
    %c0_6 = arith.constant 0 : index
    %c0_7 = arith.constant 0 : index
    %8 = vector.load %arg4[%c0_6, %c0_7] : memref<256x256xf32, #tpu.memory_space<vmem>>, vector<256x256xf32>
    %cst_8 = arith.constant dense<0.000000e+00> : vector<16x256xf32>
    %9 = tpu.matmul %7, %8, %cst_8 {dimension_numbers = #tpu.dot_dimension_numbers<[1], [0], [0], [1], [0, 0, 1, 1], [], []>} : vector<16x256xf32>, vector<256x256xf32>, vector<16x256xf32> -> vector<16x256xf32>
    %c0_9 = arith.constant 0 : index
    %c0_10 = arith.constant 0 : index
    %10 = vector.load %arg5[%c0_9, %c0_10] : memref<1x256xf32, #tpu.memory_space<vmem>>, vector<1x256xf32>
    %11 = vector.broadcast %10 : vector<1x256xf32> to vector<16x256xf32>
    %12 = arith.addf %9, %11 : vector<16x256xf32>
    %cst_11 = arith.constant 0.000000e+00 : f32
    %13 = vector.broadcast %cst_11 : f32 to vector<16x256xf32>
    %14 = arith.maximumf %12, %13 : vector<16x256xf32>
    %c0_12 = arith.constant 0 : index
    %c0_13 = arith.constant 0 : index
    %15 = vector.load %arg6[%c0_12, %c0_13] : memref<256x64xf32, #tpu.memory_space<vmem>>, vector<256x64xf32>
    %cst_14 = arith.constant dense<0.000000e+00> : vector<16x64xf32>
    %16 = tpu.matmul %14, %15, %cst_14 {dimension_numbers = #tpu.dot_dimension_numbers<[1], [0], [0], [1], [0, 0, 1, 1], [], []>} : vector<16x256xf32>, vector<256x64xf32>, vector<16x64xf32> -> vector<16x64xf32>
    %c0_15 = arith.constant 0 : index
    %c0_16 = arith.constant 0 : index
    %17 = vector.load %arg7[%c0_15, %c0_16] : memref<1x64xf32, #tpu.memory_space<vmem>>, vector<1x64xf32>
    %18 = vector.broadcast %17 : vector<1x64xf32> to vector<16x64xf32>
    %19 = arith.addf %16, %18 : vector<16x64xf32>
    %c0_17 = arith.constant 0 : index
    %c0_18 = arith.constant 0 : index
    %20 = vector.load %arg8[%c0_17, %c0_18] : memref<16x64xf32, #tpu.memory_space<vmem>>, vector<16x64xf32>
    tpu.vector_store %arg8[%c0_17, %c0_18], %19 {strides = array<i32>} : memref<16x64xf32, #tpu.memory_space<vmem>>, vector<16x64xf32>,
    return
  }
  func.func @transform_0(%arg0: i32) -> (i32, i32) {
    %c0_i32 = arith.constant 0 : i32
    %c0_i32_0 = arith.constant 0 : i32
    return %arg0, %c0_i32 : i32, i32
  }
  func.func @transform_1(%arg0: i32) -> (i32, i32) {
    %c0_i32 = arith.constant 0 : i32
    %c0_i32_0 = arith.constant 0 : i32
    %c0_i32_1 = arith.constant 0 : i32
    return %c0_i32, %c0_i32_0 : i32, i32
  }
  func.func @transform_2(%arg0: i32) -> (i32, i32) {
    %c0_i32 = arith.constant 0 : i32
    %c0_i32_0 = arith.constant 0 : i32
    %c0_i32_1 = arith.constant 0 : i32
    return %c0_i32, %c0_i32_0 : i32, i32
  }
  func.func @transform_3(%arg0: i32) -> (i32, i32) {
    %c0_i32 = arith.constant 0 : i32
    %c0_i32_0 = arith.constant 0 : i32
    %c0_i32_1 = arith.constant 0 : i32
    return %c0_i32, %c0_i32_0 : i32, i32
  }
  func.func @transform_4(%arg0: i32) -> (i32, i32) {
    %c0_i32 = arith.constant 0 : i32
    %c0_i32_0 = arith.constant 0 : i32
    %c0_i32_1 = arith.constant 0 : i32
    return %c0_i32, %c0_i32_0 : i32, i32
  }
  func.func @transform_5(%arg0: i32) -> (i32, i32) {
    %c0_i32 = arith.constant 0 : i32
    %c0_i32_0 = arith.constant 0 : i32
    %c0_i32_1 = arith.constant 0 : i32
    return %c0_i32, %c0_i32_0 : i32, i32
  }
  func.func @transform_6(%arg0: i32) -> (i32, i32) {
    %c0_i32 = arith.constant 0 : i32
    %c0_i32_0 = arith.constant 0 : i32
    %c0_i32_1 = arith.constant 0 : i32
    return %c0_i32, %c0_i32_0 : i32, i32
  }
  func.func @transform_7(%arg0: i32) -> (i32, i32) {
    %c0_i32 = arith.constant 0 : i32
    %c0_i32_0 = arith.constant 0 : i32
    return %arg0, %c0_i32 : i32, i32
  }
}

</mosaic_0001>

<bundles_post_ra>
// kernel: observation_encoder_forward.1
= control target key start
LH: loop header
LB: loop body
LE: loop exit
PB: predicated region body
PF: predicated region fallthrough
CT: control target
= control target key end

     0   :  { %12 = vsyncpa [#allocation3], 0  ;;  %s724_s0 = inlined_call_operand.vmem [shape: f32[16,32], index: 0, kind: input, shape index: {}]   ;;  %s725_s1 = inlined_call_operand.vmem [shape: f32[32,256], index: 1, kind: input, shape index: {}]   ;;  %s726_s2 = inlined_call_operand.vmem [shape: f32[1,256], index: 2, kind: input, shape index: {}]   ;;  %s727_s3 = inlined_call_operand.hbm [shape: f32[256,256], index: 3, kind: input, shape index: {}]   ;;  %s728_s4 = inlined_call_operand.vmem [shape: f32[1,256], index: 4, kind: input, shape index: {}]   ;;  %s729_s5 = inlined_call_operand.vmem [shape: f32[256,64], index: 5, kind: input, shape index: {}]   ;;  %s730_s6 = inlined_call_operand.vmem [shape: f32[1,64], index: 6, kind: input, shape index: {}]   ;;  %s731_s7 = inlined_call_operand.hbm [shape: f32[16,64], index: 7, kind: output, shape index: {}]  }
   0x1   :  { %13 = vsyncpa [#allocation4], 0  ;;  %s534_s24 = smov [#allocation2]  }
   0x2   :  { %s25_s25 = sshll.u32 %s534_s24, 4  ;;  %s26_s25 = int_to_ptr.vmem [resolvable:$true] %s25_s25 }
   0x3   :  { %s498_s26 = scalar_lea.vmem %s26_s25, 8192  ;;  %p503_p1 = scmp.lt.s32.totalorder %s26_s25, %s26_s25 }
   0x4   :  { %p499_p0 = scmp.ne.s32.totalorder %s26_s25, %s498_s26  ;;  %p504_p2 = scmp.lt.s32.totalorder %s498_s26, %s498_s26 }
   0x6   :  { %p505_p3 = por %p504_p2, %p503_p1 }
   0x8   :  { %p506_p4 = pnand %p505_p3, %p499_p0 }
   0xa   :  { %509 = shalt.err (!%p506_p4)
}
   0xb   :  { %s535_s27 = smov 256   ;;  %s536_s28 = smov 16  }
   0xc   :  { %31 = dma.hbm_to_vmem [thread:$0]  %s727_s3, 8192, %s26_s25, [#allocation3], %s535_s27, %s535_s27, %s536_s28  }
   0xd   :  { %530 = dma.done.wait [#allocation3], 8192  }
   0xe   :  { %531 = vsyncadd [#allocation3], 4294959104  ;;  %v537_v0 = vmov 0.0   ;;  %v50_v1 = vld [vmem:[%s725_s1 + $0x38] sm:$0xff]  ;;  %v49_v2 = vld [vmem:[%s725_s1 + $0x30] sm:$0xff]  ;;  %vm63_vm0 = vcmask 261120  }
   0xf   :  { %134 = vmatprep.mubr.f32.mxu0 %v537_v0  ;;  %v48_v3 = vld [vmem:[%s725_s1 + $0x28] sm:$0xff]  ;;  %94 = vmatprep.subr.mxu0 %v50_v1  ;;  %v47_v4 = vld [vmem:[%s725_s1 + $0x20] sm:$0xff]  ;;  %v46_v5 = vld [vmem:[%s725_s1 + $0x18] sm:$0xff]  ;;  %vm422_vm1 = vcmask 523264   ;;  %s538_s16 = smov [#allocation5]  }
  0x10   :  { %95 = vmatpush1.msra.mxu0 %v49_v2  ;;  %v45_v6 = vld [vmem:[%s725_s1 + $0x10] sm:$0xff]  ;;  %v182_v7 = vld [vmem:[#allocation2 + $0xf8] sm:$0xff]  ;;  %v44_v9 = vld [vmem:[%s725_s1 + $0x8] sm:$0xff]  ;;  %s430_s17 = sshll.u32 %s538_s16, 4  ;;  %s431_s17 = int_to_ptr.vmem [resolvable:$true] %s430_s17 }
  0x11   :  { %96 = vmatprep.subr.mxu0 %v48_v3  ;;  %v181_v8 = vld [vmem:[#allocation2 + $0xf0] sm:$0xff]  ;;  %227 = vmatprep.subr.mxu1 %v182_v7  ;;  %v180_v10 = vld [vmem:[#allocation2 + $0xe8] sm:$0xff]  ;;  %v179_v11 = vld [vmem:[#allocation2 + $0xe0] sm:$0xff]  ;;  %s510_s18 = scalar_lea.vmem %s431_s17, 256  ;;  %p515_p6 = scmp.lt.s32.totalorder %s431_s17, %s431_s17 }
  0x12   :  { %97 = vmatpush1.msra.mxu0 %v47_v4  ;;  %v43_v12 = vld [vmem:[%s725_s1] sm:$0xff]  ;;  %228 = vmatpush1.msra.mxu1 %v181_v8  ;;  %v178_v13 = vld [vmem:[#allocation2 + $0xd8] sm:$0xff]  ;;  %v177_v15 = vld [vmem:[#allocation2 + $0xd0] sm:$0xff]  ;;  %p511_p5 = scmp.ne.s32.totalorder %s431_s17, %s510_s18  ;;  %p516_p7 = scmp.lt.s32.totalorder %s510_s18, %s510_s18 }
  0x13   :  { %98 = vmatprep.subr.mxu0 %v46_v5  ;;  %v41_v14 = vld [vmem:[%s724_s0] sm:$0xff]  ;;  %229 = vmatprep.subr.mxu1 %v180_v10  ;;  %v176_v16 = vld [vmem:[#allocation2 + $0xc8] sm:$0xff]  ;;  %v174_v18 = vld [vmem:[#allocation2 + $0xb8] sm:$0xff] }
  0x14   :  { %99 = vmatpush1.msra.mxu0 %v45_v6  ;;  %230 = vmatpush1.msra.mxu1 %v179_v11  ;;  %v175_v17 = vld [vmem:[#allocation2 + $0xc0] sm:$0xff]  ;;  %v42_v19 = vld [vmem:[%s724_s0 + $0x8] sm:$0xff]  ;;  %v173_v20 = vld [vmem:[#allocation2 + $0xb0] sm:$0xff]  ;;  %p517_p8 = por %p516_p7, %p515_p6 }
  0x15   :  { %100 = vmatprep.subr.mxu0 %v44_v9  ;;  %231 = vmatprep.subr.mxu1 %v178_v13  ;;  %v172_v21 = vld [vmem:[#allocation2 + $0xa8] sm:$0xff]  ;;  %v171_v22 = vld [vmem:[#allocation2 + $0xa0] sm:$0xff]  ;;  %v170_v23 = vld [vmem:[#allocation2 + $0x98] sm:$0xff] }
  0x16   :  { %101 = vmatpush1.msra.mxu0 %v43_v12  ;;  %232 = vmatpush1.msra.mxu1 %v177_v15  ;;  %v169_v24 = vld [vmem:[#allocation2 + $0x90] sm:$0xff]  ;;  %v168_v25 = vld [vmem:[#allocation2 + $0x88] sm:$0xff]  ;;  %v167_v26 = vld [vmem:[#allocation2 + $0x80] sm:$0xff]  ;;  %p518_p9 = pnand %p517_p8, %p511_p5 }
  0x17   :  { %442 = vmatmul.mubr.msk.f32.vlgmr.msra.gmra.mxu0 %vm63_vm0, %v41_v14  ;;  %233 = vmatprep.subr.mxu1 %v176_v16  ;;  %v166_v27 = vld [vmem:[#allocation2 + $0x78] sm:$0xff]  ;;  %v165_v28 = vld [vmem:[#allocation2 + $0x70] sm:$0xff]  ;;  %v164_v29 = vld [vmem:[#allocation2 + $0x68] sm:$0xff] }
  0x18   :  { %140 = vmatprep.mubr.f32.mxu0 %v537_v0  ;;  %234 = vmatpush1.msra.mxu1 %v175_v17  ;;  %v163_v30 = vld [vmem:[#allocation2 + $0x60] sm:$0xff]  ;;  %v162_v31 = vld [vmem:[#allocation2 + $0x58] sm:$0xff]  ;;  %v161_v32 = vld [vmem:[#allocation2 + $0x50] sm:$0xff] }
  0x19   :  { %235 = vmatprep.subr.mxu1 %v174_v18  ;;  %v160_v33 = vld [vmem:[#allocation2 + $0x48] sm:$0xff]  ;;  %v159_v34 = vld [vmem:[#allocation2 + $0x40] sm:$0xff]  ;;  %v158_v35 = vld [vmem:[#allocation2 + $0x38] sm:$0xff] }
  0x1a   :  { %236 = vmatpush1.msra.mxu1 %v173_v20  ;;  %v157_v36 = vld [vmem:[#allocation2 + $0x30] sm:$0xff]  ;;  %v156_v37 = vld [vmem:[#allocation2 + $0x28] sm:$0xff]  ;;  %v155_v38 = vld [vmem:[#allocation2 + $0x20] sm:$0xff] }
  0x1b   :  { %443 = vmatmul.mubr.msk.f32.gmra.mxu0 %vm63_vm0, %v42_v19  ;;  %237 = vmatprep.subr.mxu1 %v172_v21  ;;  %v154_v39 = vld [vmem:[#allocation2 + $0x18] sm:$0xff]  ;;  %v153_v40 = vld [vmem:[#allocation2 + $0x10] sm:$0xff]  ;;  %v152_v41 = vld [vmem:[#allocation2 + $0x8] sm:$0xff] }
  0x1c   :  { %238 = vmatpush1.msra.mxu1 %v171_v22  ;;  %v151_v42 = vld [vmem:[#allocation2] sm:$0xff]  ;;  %v214_v43 = vld [vmem:[#allocation2 + $0x1f8] sm:$0xff]  ;;  %v213_v44 = vld [vmem:[#allocation2 + $0x1f0] sm:$0xff] }
  0x1d   :  { %239 = vmatprep.subr.mxu1 %v170_v23  ;;  %v212_v45 = vld [vmem:[#allocation2 + $0x1e8] sm:$0xff]  ;;  %v211_v46 = vld [vmem:[#allocation2 + $0x1e0] sm:$0xff]  ;;  %v210_v47 = vld [vmem:[#allocation2 + $0x1d8] sm:$0xff] }
  0x1e   :  { %240 = vmatpush1.msra.mxu1 %v169_v24  ;;  %v209_v48 = vld [vmem:[#allocation2 + $0x1d0] sm:$0xff]  ;;  %v208_v49 = vld [vmem:[#allocation2 + $0x1c8] sm:$0xff]  ;;  %v207_v50 = vld [vmem:[#allocation2 + $0x1c0] sm:$0xff] }
  0x1f   :  { %241 = vmatprep.subr.mxu1 %v168_v25  ;;  %v206_v51 = vld [vmem:[#allocation2 + $0x1b8] sm:$0xff]  ;;  %v205_v52 = vld [vmem:[#allocation2 + $0x1b0] sm:$0xff]  ;;  %v204_v53 = vld [vmem:[#allocation2 + $0x1a8] sm:$0xff] }
  0x20   :  { %242 = vmatpush1.msra.mxu1 %v167_v26  ;;  %v203_v54 = vld [vmem:[#allocation2 + $0x1a0] sm:$0xff]  ;;  %v202_v55 = vld [vmem:[#allocation2 + $0x198] sm:$0xff]  ;;  %v201_v56 = vld [vmem:[#allocation2 + $0x190] sm:$0xff] }
  0x21   :  { %243 = vmatprep.subr.mxu1 %v166_v27  ;;  %v200_v57 = vld [vmem:[#allocation2 + $0x188] sm:$0xff]  ;;  %v199_v58 = vld [vmem:[#allocation2 + $0x180] sm:$0xff]  ;;  %v198_v59 = vld [vmem:[#allocation2 + $0x178] sm:$0xff] }
  0x22   :  { %244 = vmatpush1.msra.mxu1 %v165_v28  ;;  %v197_v60 = vld [vmem:[#allocation2 + $0x170] sm:$0xff]  ;;  %v196_v61 = vld [vmem:[#allocation2 + $0x168] sm:$0xff]  ;;  %v195_v62 = vld [vmem:[#allocation2 + $0x160] sm:$0xff] }
  0x23   :  { %245 = vmatprep.subr.mxu1 %v164_v29  ;;  %v194_v63 = vld [vmem:[#allocation2 + $0x158] sm:$0xff]  ;;  %v193_v0 = vld [vmem:[#allocation2 + $0x150] sm:$0xff]  ;;  %v192_v1 = vld [vmem:[#allocation2 + $0x148] sm:$0xff] }
  0x24   :  { %246 = vmatpush1.msra.mxu1 %v163_v30  ;;  %v191_v2 = vld [vmem:[#allocation2 + $0x140] sm:$0xff]  ;;  %v190_v3 = vld [vmem:[#allocation2 + $0x138] sm:$0xff]  ;;  %v189_v4 = vld [vmem:[#allocation2 + $0x130] sm:$0xff] }
  0x25   :  { %247 = vmatprep.subr.mxu1 %v162_v31  ;;  %v188_v5 = vld [vmem:[#allocation2 + $0x128] sm:$0xff]  ;;  %v187_v6 = vld [vmem:[#allocation2 + $0x120] sm:$0xff]  ;;  %v186_v7 = vld [vmem:[#allocation2 + $0x118] sm:$0xff] }
  0x26   :  { %248 = vmatpush1.msra.mxu1 %v161_v32  ;;  %v185_v8 = vld [vmem:[#allocation2 + $0x110] sm:$0xff]  ;;  %v184_v9 = vld [vmem:[#allocation2 + $0x108] sm:$0xff]  ;;  %v183_v10 = vld [vmem:[#allocation2 + $0x100] sm:$0xff] }
  0x27   :  { %249 = vmatprep.subr.mxu1 %v160_v33  ;;  %v339_v11 = vld [vmem:[%s729_s5 + $0xf8] sm:$0xff]  ;;  %v338_v13 = vld [vmem:[%s729_s5 + $0xf0] sm:$0xff]  ;;  %v337_v15 = vld [vmem:[%s729_s5 + $0xe8] sm:$0xff] }
  0x28   :  { %250 = vmatpush1.msra.mxu1 %v159_v34  ;;  %v323_v12 = vld [vmem:[%s729_s5 + $0x78] sm:$0xff]  ;;  %445 = vmatprep.subr.mxu0 %v339_v11  ;;  %v322_v14 = vld [vmem:[%s729_s5 + $0x70] sm:$0xff]  ;;  %v321_v16 = vld [vmem:[%s729_s5 + $0x68] sm:$0xff] }
  0x29   :  { %251 = vmatprep.subr.mxu1 %v158_v35  ;;  %446 = vmatpush3.msra.mxu0 %v323_v12  ;;  %v336_v17 = vld [vmem:[%s729_s5 + $0xe0] sm:$0xff]  ;;  %v335_v19 = vld [vmem:[%s729_s5 + $0xd8] sm:$0xff]  ;;  %v334_v21 = vld [vmem:[%s729_s5 + $0xd0] sm:$0xff]  ;;  %v53_v35 = vlaneseq }
  0x2a   :  { %252 = vmatpush1.msra.mxu1 %v157_v36  ;;  %447 = vmatprep.subr.mxu0 %v338_v13  ;;  %v320_v18 = vld [vmem:[%s729_s5 + $0x60] sm:$0xff]  ;;  %v319_v20 = vld [vmem:[%s729_s5 + $0x58] sm:$0xff]  ;;  %v318_v22 = vld [vmem:[%s729_s5 + $0x50] sm:$0xff] }
  0x2b   :  { %253 = vmatprep.subr.mxu1 %v156_v37  ;;  %448 = vmatpush3.msra.mxu0 %v322_v14  ;;  %v333_v23 = vld [vmem:[%s729_s5 + $0xc8] sm:$0xff]  ;;  %v332_v25 = vld [vmem:[%s729_s5 + $0xc0] sm:$0xff]  ;;  %v331_v27 = vld [vmem:[%s729_s5 + $0xb8] sm:$0xff]  ;;  %v54_v36 = vshrl.u32 %v53_v35, 7 }
  0x2c   :  { %254 = vmatpush1.msra.mxu1 %v155_v38  ;;  %449 = vmatprep.subr.mxu0 %v337_v15  ;;  %v317_v24 = vld [vmem:[%s729_s5 + $0x48] sm:$0xff]  ;;  %v316_v26 = vld [vmem:[%s729_s5 + $0x40] sm:$0xff]  ;;  %v315_v28 = vld [vmem:[%s729_s5 + $0x38] sm:$0xff] }
  0x2d   :  { %255 = vmatprep.subr.mxu1 %v154_v39  ;;  %450 = vmatpush3.msra.mxu0 %v321_v16  ;;  %v330_v29 = vld [vmem:[%s729_s5 + $0xb0] sm:$0xff]  ;;  %v329_v31 = vld [vmem:[%s729_s5 + $0xa8] sm:$0xff]  ;;  %v328_v33 = vld [vmem:[%s729_s5 + $0xa0] sm:$0xff]  ;;  %v55_v37 = vsub.s32 0, %v54_v36  ;;  %v59_v39 = vsub.s32 1, %v54_v36 }
  0x2e   :  { %256 = vmatpush1.msra.mxu1 %v153_v40  ;;  %451 = vmatprep.subr.mxu0 %v336_v17  ;;  %v314_v30 = vld [vmem:[%s729_s5 + $0x30] sm:$0xff]  ;;  %v313_v32 = vld [vmem:[%s729_s5 + $0x28] sm:$0xff]  ;;  %v312_v34 = vld [vmem:[%s729_s5 + $0x20] sm:$0xff] }
  0x2f   :  { %257 = vmatprep.subr.mxu1 %v152_v41  ;;  %452 = vmatpush3.msra.mxu0 %v320_v18  ;;  %v51_v38 = vld [vmem:[%s726_s2] sm:$0x3] }
  0x30   :  { %258 = vmatpush1.msra.mxu1 %v151_v42  ;;  %453 = vmatprep.subr.mxu0 %v335_v19  ;;  %v56_v40 = vrot.slane %v51_v38, %v55_v37  ;;  %v60_v41 = vrot.slane %v51_v38, %v59_v39  ;;  %v444_v14 = vld [vmem:[%s730_s6] ss:$0 sm:$0xff] }
  0x31   :  { %259 = vmatprep.subr.mxu1 %v214_v43  ;;  %454 = vmatpush3.msra.mxu0 %v319_v20 }
  0x32   :  { %260 = vmatpush2.msra.mxu1 %v213_v44  ;;  %455 = vmatprep.subr.mxu0 %v334_v21 }
  0x33   :  { %261 = vmatprep.subr.mxu1 %v212_v45  ;;  %456 = vmatpush3.msra.mxu0 %v318_v22 }
  0x34   :  { %262 = vmatpush2.msra.mxu1 %v211_v46  ;;  %457 = vmatprep.subr.mxu0 %v333_v23 }
  0x35   :  { %263 = vmatprep.subr.mxu1 %v210_v47  ;;  %458 = vmatpush3.msra.mxu0 %v317_v24 }
  0x36   :  { %264 = vmatpush2.msra.mxu1 %v209_v48  ;;  %459 = vmatprep.subr.mxu0 %v332_v25 }
  0x37   :  { %265 = vmatprep.subr.mxu1 %v208_v49  ;;  %460 = vmatpush3.msra.mxu0 %v316_v26 }
  0x38   :  { %266 = vmatpush2.msra.mxu1 %v207_v50  ;;  %461 = vmatprep.subr.mxu0 %v331_v27 }
  0x39   :  { %267 = vmatprep.subr.mxu1 %v206_v51  ;;  %462 = vmatpush3.msra.mxu0 %v315_v28 }
  0x3a   :  { %268 = vmatpush2.msra.mxu1 %v205_v52  ;;  %463 = vmatprep.subr.mxu0 %v330_v29 }
  0x3b   :  { %269 = vmatprep.subr.mxu1 %v204_v53  ;;  %464 = vmatpush3.msra.mxu0 %v314_v30 }
  0x3c   :  { %270 = vmatpush2.msra.mxu1 %v203_v54  ;;  %465 = vmatprep.subr.mxu0 %v329_v31  ;;  %v327_v54 = vld [vmem:[%s729_s5 + $0x98] sm:$0xff] }
  0x3d   :  { %271 = vmatprep.subr.mxu1 %v202_v55  ;;  %466 = vmatpush3.msra.mxu0 %v313_v32  ;;  %v311_v55 = vld [vmem:[%s729_s5 + $0x18] sm:$0xff] }
  0x3e   :  { %272 = vmatpush2.msra.mxu1 %v201_v56  ;;  %467 = vmatprep.subr.mxu0 %v328_v33  ;;  %v326_v56 = vld [vmem:[%s729_s5 + $0x90] sm:$0xff] }
  0x3f   :  { %273 = vmatprep.subr.mxu1 %v200_v57  ;;  %468 = vmatpush3.msra.mxu0 %v312_v34  ;;  %v310_v57 = vld [vmem:[%s729_s5 + $0x10] sm:$0xff] }
  0x40   :  { %274 = vmatpush2.msra.mxu1 %v199_v58  ;;  %469 = vmatprep.subr.mxu0 %v327_v54  ;;  %v325_v58 = vld [vmem:[%s729_s5 + $0x88] sm:$0xff] }
  0x41   :  { %275 = vmatprep.subr.mxu1 %v198_v59  ;;  %470 = vmatpush3.msra.mxu0 %v311_v55  ;;  %v309_v59 = vld [vmem:[%s729_s5 + $0x8] sm:$0xff] }
  0x42   :  { %276 = vmatpush2.msra.mxu1 %v197_v60  ;;  %471 = vmatprep.subr.mxu0 %v326_v56  ;;  %v324_v60 = vld [vmem:[%s729_s5 + $0x80] sm:$0xff] }
  0x43   :  { %277 = vmatprep.subr.mxu1 %v196_v61  ;;  %472 = vmatpush3.msra.mxu0 %v310_v57  ;;  %v308_v61 = vld [vmem:[%s729_s5] sm:$0xff] }
  0x44   :  { %278 = vmatpush2.msra.mxu1 %v195_v62  ;;  %473 = vmatprep.subr.mxu0 %v325_v58  ;;  %v215_v62 = vld [vmem:[%s728_s4] sm:$0x3] }
  0x45   :  { %279 = vmatprep.subr.mxu1 %v194_v63  ;;  %474 = vmatpush3.msra.mxu0 %v309_v59  ;;  %v220_v63 = vrot.slane %v215_v62, %v55_v37 }
  0x46   :  { %280 = vmatpush2.msra.mxu1 %v193_v0  ;;  %475 = vmatprep.subr.mxu0 %v324_v60  ;;  %v224_v0 = vrot.slane %v215_v62, %v59_v39 }
  0x47   :  { %281 = vmatprep.subr.mxu1 %v192_v1  ;;  %476 = vmatpush3.msra.mxu0 %v308_v61 }
  0x48   :  { %282 = vmatpush2.msra.mxu1 %v191_v2 }
  0x49   :  { %283 = vmatprep.subr.mxu1 %v190_v3 }
  0x4a   :  { %284 = vmatpush2.msra.mxu1 %v189_v4 }
  0x4b   :  { %285 = vmatprep.subr.mxu1 %v188_v5 }
  0x4c   :  { %286 = vmatpush2.msra.mxu1 %v187_v6 }
  0x4d   :  { %287 = vmatprep.subr.mxu1 %v186_v7 }
  0x4e   :  { %288 = vmatpush2.msra.mxu1 %v185_v8 }
  0x4f   :  { %289 = vmatprep.subr.mxu1 %v184_v9 }
  0x50   :  { %290 = vmatpush2.msra.mxu1 %v183_v10 }
  0xd7   :  { %v136_v42 = vpop.f32.mrf.mxu0 }
  0xd8   :  { %v137_v43 = vadd.f32 %v136_v42, %v56_v40 }
  0xd9   :  { %v138_v44 = vpop.f32.mrf.mxu0 }
  0xda   :  { %v139_v45 = vadd.f32 %v138_v44, %v60_v41  ;;  %v147_v48 = vmax.f32 %v137_v43, 0.0 }
  0xdb   :  { %v142_v46 = vpop.f32.mrf.mxu0 }
  0xdc   :  { %v148_v47 = vmax.f32 %v139_v45, 0.0  ;;  %v143_v49 = vadd.f32 %v142_v46, %v56_v40 }
  0xdd   :  { %v144_v50 = vpop.f32.mrf.mxu0 }
  0xde   :  { %v145_v51 = vadd.f32 %v144_v50, %v60_v41  ;;  %291 = vmatprep.mubr.f32.mxu1 %v148_v47  ;;  %v149_v53 = vmax.f32 %v143_v49, 0.0 }
  0xdf   :  { %292 = vmatmul.mubr.f32.vlgmr.msra.gmra.mxu1 %v147_v48 }
  0xe0   :  { %v150_v52 = vmax.f32 %v145_v51, 0.0 }
  0xe2   :  { %297 = vmatprep.mubr.f32.mxu1 %v150_v52 }
  0xe3   :  { %298 = vmatmul.mubr.f32.gmra.mxu1 %v149_v53 }
 0x19f   :  { %v293_v1 = vpop.f32.mrf.mxu1 }
 0x1a0   :  { %v294_v2 = vadd.f32 %v293_v1, %v220_v63 }
 0x1a1   :  { %v295_v3 = vpop.f32.mrf.mxu1 }
 0x1a2   :  { %v296_v4 = vadd.f32 %v295_v3, %v224_v0  ;;  %v304_v7 = vmax.f32 %v294_v2, 0.0 }
 0x1a3   :  { %v299_v5 = vpop.f32.mrf.mxu1 }
 0x1a4   :  { %v305_v6 = vmax.f32 %v296_v4, 0.0  ;;  %v300_v8 = vadd.f32 %v299_v5, %v220_v63 }
 0x1a5   :  { %v301_v9 = vpop.f32.mrf.mxu1 }
 0x1a6   :  { %v302_v10 = vadd.f32 %v301_v9, %v224_v0  ;;  %411 = vmatprep.mubr.f32.mxu0 %v305_v6  ;;  %v306_v12 = vmax.f32 %v300_v8, 0.0 }
 0x1a7   :  { %412 = vmatmul.mubr.f32.vlgmr.msra.gmra.mxu0 %v304_v7 }
 0x1a8   :  { %v307_v11 = vmax.f32 %v302_v10, 0.0 }
 0x1aa   :  { %416 = vmatprep.mubr.f32.mxu0 %v307_v11 }
 0x1ab   :  { %417 = vmatmul.mubr.f32.gmra.mxu0 %v306_v12 }
 0x267   :  { %v477_v13 = vpop.f32.mrf.mxu0 }
 0x269   :  { %v478_v15 = vpop.f32.mrf.mxu0 }
 0x26a   :  { %v479_v16 = vadd.f32 %v478_v15, %v477_v13 }
 0x26b   :  { %v480_v17 = vpop.f32.mrf.mxu0 }
 0x26c   :  { %v414_v18 = vadd.f32 %v479_v16, %v444_v14 }
 0x26d   :  { %v481_v19 = vpop.f32.mrf.mxu0 }
 0x26e   :  { %423 = vst.msk [vmem:[#allocation5] sm:$0xff] %vm422_vm1, %v414_v18  ;;  %v482_v20 = vadd.f32 %v481_v19, %v480_v17 }
 0x270   :  { %v419_v21 = vadd.f32 %v482_v20, %v444_v14 }
 0x272   :  { %424 = vst.msk [vmem:[#allocation5 + $0x8] sm:$0xff] %vm422_vm1, %v419_v21 }
 0x273   :  { %521 = shalt.err (!%p518_p9)
}
 0x274   :  { %s539_s6 = smov 128   ;;  %s540_s19 = smov 8  }
 0x275   :  { %436 = dma.vmem_to_hbm [thread:$0]  %s431_s17, 256, %s731_s7, [#allocation4], %s539_s6, %s539_s6, %s540_s19  }
 0x276   :  { %532 = dma.done.wait [#allocation4], 256  }
 0x277   :  { %533 = vsyncadd [#allocation4], 4294967040 }
 0x278   :  { %440 = vsyncpa [#allocation3], 1 }
 0x279   :  { %441 = vsyncpa [#allocation4], 1 }

</bundles_post_ra>
